<compile_context>
chip_gen: v7x
topology: tpu7x:2x2x1
jax: 0.10.0
libtpu: 0.0.40
codegen_flags: <defaults>
</compile_context>

<pallas_src>
import math

import jax
import jax.numpy as jnp
from jax.experimental import pallas as pl
from jax.experimental.pallas import tpu as pltpu


OBS_SIZE = 23        # 12 sprite coords + 5 flags + 6 game scalars (MarioEnv.get_state)
N_ACTIONS = 14       # len(Actions)
HIDDEN = 128

SUBLANE = 8
BATCH_TILE = 2048    # max rows per grid step (per-tile VMEM ~ a few MB, fine on v5e/v6e/v7x)


def _round_up(x, m):
    return ((x + m - 1) // m) * m


def dqn_kernel(x_ref, w1_ref, b1_ref, w2_ref, b2_ref, w3_ref, b3_ref, o_ref):
    """Fused 3-layer MLP on one batch tile: out = relu(relu(x@W1+b1)@W2+b2)@W3+b3.

    Dots accumulate in f32 on the MXU; bias add and ReLU stay in f32 (VPU), and the
    activations are only downcast (if at all) right before the next dot.
    """
    x = x_ref[...]
    h1 = jnp.dot(x, w1_ref[...], preferred_element_type=jnp.float32) + b1_ref[...]
    h1 = jnp.maximum(h1, 0.0)
    h2 = (jnp.dot(h1.astype(w2_ref.dtype), w2_ref[...],
                  preferred_element_type=jnp.float32) + b2_ref[...])
    h2 = jnp.maximum(h2, 0.0)
    o_ref[...] = (jnp.dot(h2.astype(w3_ref.dtype), w3_ref[...],
                          preferred_element_type=jnp.float32)
                  + b3_ref[...]).astype(o_ref.dtype)


def prepare_params(params, compute_dtype=jnp.float32):
    """One-time weight/bias preparation (call once per param update, not per forward).

    Weights are stored UNPADDED (full-dim BlockSpecs handle the 23/14 edges); biases
    are kept in f32 so the accumulator math stays f32 on every TPU generation.
    compute_dtype=jnp.bfloat16 enables bf16 MXU operands (validate Q-value accuracy
    before using in the training loop).
    """
    w1, b1, w2, b2, w3, b3 = params
    w1p = w1.astype(compute_dtype)                       # (OBS_SIZE, HIDDEN)
    b1p = b1.reshape(1, HIDDEN).astype(jnp.float32)
    w2p = w2.astype(compute_dtype)                       # (HIDDEN, HIDDEN)
    b2p = b2.reshape(1, HIDDEN).astype(jnp.float32)
    w3p = w3.astype(compute_dtype)                       # (HIDDEN, N_ACTIONS)
    b3p = b3.reshape(1, N_ACTIONS).astype(jnp.float32)
    return tuple(jax.device_put(p) for p in (w1p, b1p, w2p, b2p, w3p, b3p))


@jax.jit
def dqn_forward(x, padded_params):
    """x: (B, OBS_SIZE) float32 -> (B, N_ACTIONS) float32 Q-values."""
    w1p, b1p, w2p, b2p, w3p, b3p = padded_params
    B, obs = x.shape
    x = x.astype(w1p.dtype)   # no-op for the default f32 path

    # Batch tiling:
    #  - small (per-env-step / typical replay) batches: one tile, block dims == full
    #    array dims, single grid step -> no step overhead on the hot RL loop.
    #  - large batches: an EVEN number of balanced tiles (<= BATCH_TILE rows each,
    #    rounded to 8 sublanes) so the "parallel" axis load-balances v7x's 2 TCs.
    if B <= BATCH_TILE:
        tb = B
    else:
        tiles = pl.cdiv(B, BATCH_TILE)
        if tiles % 2:
            tiles += 1
        tb = _round_up(pl.cdiv(B, tiles), SUBLANE)
    grid = (pl.cdiv(B, tb),)   # ragged final tile handled by Pallas (masked writes)

    def rep(p):
        # Weights/biases: same (full) block every grid step -> stay resident in VMEM.
        return pl.BlockSpec(p.shape, lambda i: (0, 0))

    out = pl.pallas_call(
        dqn_kernel,
        out_shape=jax.ShapeDtypeStruct((B, N_ACTIONS), jnp.float32),
        grid=grid,
        in_specs=[
            pl.BlockSpec((tb, obs), lambda i: (i, 0)),   # x tile, unpadded lanes
            rep(w1p), rep(b1p),                          # W1 (23,128), b1 (1,128)
            rep(w2p), rep(b2p),                          # W2 (128,128), b2 (1,128)
            rep(w3p), rep(b3p),                          # W3 (128,14),  b3 (1,14)
        ],
        out_specs=pl.BlockSpec((tb, N_ACTIONS), lambda i: (i, 0)),
        compiler_params=pltpu.CompilerParams(
            dimension_semantics=("parallel",),           # shard tiles over TCs (v7x)
            vmem_limit_bytes=32 * 1024 * 1024),          # headroom for big tiles
    )(x, w1p, b1p, w2p, b2p, w3p, b3p)

    return out


def init_params(key):
    """Deterministic init matching nn.Linear shapes (stored as (in, out))."""
    ks = jax.random.split(key, 6)

    def linear(kw, kb, fan_in, fan_out):
        bound = 1.0 / math.sqrt(fan_in)
        w = jax.random.uniform(kw, (fan_in, fan_out), jnp.float32, -bound, bound)
        b = jax.random.uniform(kb, (fan_out,), jnp.float32, -bound, bound)
        return w, b

    w1, b1 = linear(ks[0], ks[1], OBS_SIZE, HIDDEN)
    w2, b2 = linear(ks[2], ks[3], HIDDEN, HIDDEN)
    w3, b3 = linear(ks[4], ks[5], HIDDEN, N_ACTIONS)
    return (w1, b1, w2, b2, w3, b3)


def reference_forward(x, params):
    w1, b1, w2, b2, w3, b3 = params
    h1 = jnp.maximum(x @ w1 + b1, 0.0)
    h2 = jnp.maximum(h1 @ w2 + b2, 0.0)
    return h2 @ w3 + b3


if __name__ == "__main__":
    key = jax.random.PRNGKey(0)
    k_x, k_p, k_big, k_huge = jax.random.split(key, 4)

    params = init_params(k_p)
    padded = prepare_params(params)              # one-time weight prep, f32 path

    # 1) Small batch: the per-env-step DQN inference path (single grid tile).
    batch = 2
    x = jax.random.uniform(k_x, (batch, OBS_SIZE), jnp.float32, 0.0, 255.0)
    q_values = dqn_forward(x, padded)
    jax.block_until_ready(q_values)
    q_ref = reference_forward(x, params)
    assert q_values.shape == (batch, N_ACTIONS)
    assert jnp.allclose(q_values, q_ref, atol=1e-4, rtol=1e-4)

    # 2) Replay-sized batch (<= BATCH_TILE): still a single tile, no padding slabs.
    big = 1000
    xb = jax.random.uniform(k_big, (big, OBS_SIZE), jnp.float32, 0.0, 255.0)
    qb = dqn_forward(xb, padded)
    jax.block_until_ready(qb)
    qb_ref = reference_forward(xb, params)
    assert qb.shape == (big, N_ACTIONS)
    assert jnp.allclose(qb, qb_ref, atol=1e-3, rtol=1e-4)

    # 3) Large batch: exercises the balanced even grid (4 tiles of 1256, last ragged)
    #    and the v7x two-TensorCore parallel path.
    huge = 5000
    xh = jax.random.uniform(k_huge, (huge, OBS_SIZE), jnp.float32, 0.0, 255.0)
    qh = dqn_forward(xh, padded)
    jax.block_until_ready(qh)
    qh_ref = reference_forward(xh, params)
    assert qh.shape == (huge, N_ACTIONS)
    assert jnp.allclose(qh, qh_ref, atol=1e-3, rtol=1e-4)

    # 4) Optional bf16-operand path (MXU rate / DMA win on v6e/v7x); loose check only,
    #    since bf16 operands perturb Q-values (inputs up to 255).
    padded_bf16 = prepare_params(params, compute_dtype=jnp.bfloat16)
    qh_bf16 = dqn_forward(xh, padded_bf16)
    jax.block_until_ready(qh_bf16)
    max_err = jnp.max(jnp.abs(qh_bf16 - qh_ref))
    scale = jnp.max(jnp.abs(qh_ref)) + 1.0
    assert max_err < 0.05 * scale, (max_err, scale)

    print("KERNEL_OK")
</pallas_src>

<mosaic_0001>
module attributes {stable_mosaic.version = 11 : i64} {
  func.func @dqn_kernel(%arg0: i32, %arg1: memref<2x23xf32, #tpu.memory_space<vmem>>, %arg2: memref<23x128xf32, #tpu.memory_space<vmem>>, %arg3: memref<1x128xf32, #tpu.memory_space<vmem>>, %arg4: memref<128x128xf32, #tpu.memory_space<vmem>>, %arg5: memref<1x128xf32, #tpu.memory_space<vmem>>, %arg6: memref<128x14xf32, #tpu.memory_space<vmem>>, %arg7: memref<1x14xf32, #tpu.memory_space<vmem>>, %arg8: memref<2x14xf32, #tpu.memory_space<vmem>>) attributes {dimension_semantics = [#tpu.dimension_semantics<parallel>], iteration_bounds = array<i64: 1>, scalar_prefetch = 0 : i64, scratch_operands = 0 : i64, tpu.core_type = #tpu.core_type<tc>, window_params = [{transform_indices = @transform_0, window_bounds = array<i64: 2, 23>}, {pipeline_mode = #tpu.pipeline_mode<synchronous>, transform_indices = @transform_1, window_bounds = array<i64: 23, 128>}, {pipeline_mode = #tpu.pipeline_mode<synchronous>, transform_indices = @transform_2, window_bounds = array<i64: 1, 128>}, {pipeline_mode = #tpu.pipeline_mode<synchronous>, transform_indices = @transform_3, window_bounds = array<i64: 128, 128>}, {pipeline_mode = #tpu.pipeline_mode<synchronous>, transform_indices = @transform_4, window_bounds = array<i64: 1, 128>}, {pipeline_mode = #tpu.pipeline_mode<synchronous>, transform_indices = @transform_5, window_bounds = array<i64: 128, 14>}, {pipeline_mode = #tpu.pipeline_mode<synchronous>, transform_indices = @transform_6, window_bounds = array<i64: 1, 14>}, {transform_indices = @transform_7, window_bounds = array<i64: 2, 14>}]} {
    %c0 = arith.constant 0 : index
    %c0_0 = arith.constant 0 : index
    %0 = vector.load %arg1[%c0, %c0_0] : memref<2x23xf32, #tpu.memory_space<vmem>>, vector<2x23xf32>
    %c0_1 = arith.constant 0 : index
    %c0_2 = arith.constant 0 : index
    %1 = vector.load %arg2[%c0_1, %c0_2] : memref<23x128xf32, #tpu.memory_space<vmem>>, vector<23x128xf32>
    %cst = arith.constant dense<0.000000e+00> : vector<2x128xf32>
    %2 = tpu.matmul %0, %1, %cst {dimension_numbers = #tpu.dot_dimension_numbers<[1], [0], [0], [1], [0, 0, 1, 1], [], []>} : vector<2x23xf32>, vector<23x128xf32>, vector<2x128xf32> -> vector<2x128xf32>
    %c0_3 = arith.constant 0 : index
    %c0_4 = arith.constant 0 : index
    %3 = vector.load %arg3[%c0_3, %c0_4] : memref<1x128xf32, #tpu.memory_space<vmem>>, vector<1x128xf32>
    %4 = vector.broadcast %3 : vector<1x128xf32> to vector<2x128xf32>
    %5 = arith.addf %2, %4 : vector<2x128xf32>
    %cst_5 = arith.constant 0.000000e+00 : f32
    %6 = vector.broadcast %cst_5 : f32 to vector<2x128xf32>
    %7 = arith.maximumf %5, %6 : vector<2x128xf32>
    %c0_6 = arith.constant 0 : index
    %c0_7 = arith.constant 0 : index
    %8 = vector.load %arg4[%c0_6, %c0_7] : memref<128x128xf32, #tpu.memory_space<vmem>>, vector<128x128xf32>
    %cst_8 = arith.constant dense<0.000000e+00> : vector<2x128xf32>
    %9 = tpu.matmul %7, %8, %cst_8 {dimension_numbers = #tpu.dot_dimension_numbers<[1], [0], [0], [1], [0, 0, 1, 1], [], []>} : vector<2x128xf32>, vector<128x128xf32>, vector<2x128xf32> -> vector<2x128xf32>
    %c0_9 = arith.constant 0 : index
    %c0_10 = arith.constant 0 : index
    %10 = vector.load %arg5[%c0_9, %c0_10] : memref<1x128xf32, #tpu.memory_space<vmem>>, vector<1x128xf32>
    %11 = vector.broadcast %10 : vector<1x128xf32> to vector<2x128xf32>
    %12 = arith.addf %9, %11 : vector<2x128xf32>
    %cst_11 = arith.constant 0.000000e+00 : f32
    %13 = vector.broadcast %cst_11 : f32 to vector<2x128xf32>
    %14 = arith.maximumf %12, %13 : vector<2x128xf32>
    %c0_12 = arith.constant 0 : index
    %c0_13 = arith.constant 0 : index
    %15 = vector.load %arg6[%c0_12, %c0_13] : memref<128x14xf32, #tpu.memory_space<vmem>>, vector<128x14xf32>
    %cst_14 = arith.constant dense<0.000000e+00> : vector<2x14xf32>
    %16 = tpu.matmul %14, %15, %cst_14 {dimension_numbers = #tpu.dot_dimension_numbers<[1], [0], [0], [1], [0, 0, 1, 1], [], []>} : vector<2x128xf32>, vector<128x14xf32>, vector<2x14xf32> -> vector<2x14xf32>
    %c0_15 = arith.constant 0 : index
    %c0_16 = arith.constant 0 : index
    %17 = vector.load %arg7[%c0_15, %c0_16] : memref<1x14xf32, #tpu.memory_space<vmem>>, vector<1x14xf32>
    %18 = vector.broadcast %17 : vector<1x14xf32> to vector<2x14xf32>
    %19 = arith.addf %16, %18 : vector<2x14xf32>
    %c0_17 = arith.constant 0 : index
    %c0_18 = arith.constant 0 : index
    %20 = vector.load %arg8[%c0_17, %c0_18] : memref<2x14xf32, #tpu.memory_space<vmem>>, vector<2x14xf32>
    tpu.vector_store %arg8[%c0_17, %c0_18], %19 {strides = array<i32>} : memref<2x14xf32, #tpu.memory_space<vmem>>, vector<2x14xf32>,
    return
  }
  func.func @transform_0(%arg0: i32) -> (i32, i32) {
    %c0_i32 = arith.constant 0 : i32
    %c0_i32_0 = arith.constant 0 : i32
    return %arg0, %c0_i32 : i32, i32
  }
  func.func @transform_1(%arg0: i32) -> (i32, i32) {
    %c0_i32 = arith.constant 0 : i32
    %c0_i32_0 = arith.constant 0 : i32
    %c0_i32_1 = arith.constant 0 : i32
    return %c0_i32, %c0_i32_0 : i32, i32
  }
  func.func @transform_2(%arg0: i32) -> (i32, i32) {
    %c0_i32 = arith.constant 0 : i32
    %c0_i32_0 = arith.constant 0 : i32
    %c0_i32_1 = arith.constant 0 : i32
    return %c0_i32, %c0_i32_0 : i32, i32
  }
  func.func @transform_3(%arg0: i32) -> (i32, i32) {
    %c0_i32 = arith.constant 0 : i32
    %c0_i32_0 = arith.constant 0 : i32
    %c0_i32_1 = arith.constant 0 : i32
    return %c0_i32, %c0_i32_0 : i32, i32
  }
  func.func @transform_4(%arg0: i32) -> (i32, i32) {
    %c0_i32 = arith.constant 0 : i32
    %c0_i32_0 = arith.constant 0 : i32
    %c0_i32_1 = arith.constant 0 : i32
    return %c0_i32, %c0_i32_0 : i32, i32
  }
  func.func @transform_5(%arg0: i32) -> (i32, i32) {
    %c0_i32 = arith.constant 0 : i32
    %c0_i32_0 = arith.constant 0 : i32
    %c0_i32_1 = arith.constant 0 : i32
    return %c0_i32, %c0_i32_0 : i32, i32
  }
  func.func @transform_6(%arg0: i32) -> (i32, i32) {
    %c0_i32 = arith.constant 0 : i32
    %c0_i32_0 = arith.constant 0 : i32
    %c0_i32_1 = arith.constant 0 : i32
    return %c0_i32, %c0_i32_0 : i32, i32
  }
  func.func @transform_7(%arg0: i32) -> (i32, i32) {
    %c0_i32 = arith.constant 0 : i32
    %c0_i32_0 = arith.constant 0 : i32
    return %arg0, %c0_i32 : i32, i32
  }
}

</mosaic_0001>

<bundles_post_ra>
// kernel: dqn_forward.1
= control target key start
LH: loop header
LB: loop body
LE: loop exit
PB: predicated region body
PF: predicated region fallthrough
CT: control target
= control target key end

     0   :  { %v521_v2 = vmov 0.0|0.0   ;;  %vm522_vm0 = vmmov 0   ;;  %v523_v5 = vmov 0.0   ;;  %vm42_vm1 = vcmask 1046528   ;;  %s714_s0 = inlined_call_operand.vmem [shape: f32[2,23], index: 0, kind: input, shape index: {}]   ;;  %s715_s1 = inlined_call_operand.vmem [shape: f32[23,128], index: 1, kind: input, shape index: {}]   ;;  %s716_s2 = inlined_call_operand.vmem [shape: f32[1,128], index: 2, kind: input, shape index: {}]   ;;  %s717_s3 = inlined_call_operand.vmem [shape: f32[128,128], index: 3, kind: input, shape index: {}]   ;;  %s718_s4 = inlined_call_operand.vmem [shape: f32[1,128], index: 4, kind: input, shape index: {}]   ;;  %s719_s5 = inlined_call_operand.vmem [shape: f32[128,14], index: 5, kind: input, shape index: {}]   ;;  %s720_s6 = inlined_call_operand.vmem [shape: f32[1,14], index: 6, kind: input, shape index: {}]   ;;  %s721_s7 = inlined_call_operand.hbm [shape: f32[2,14], index: 7, kind: output, shape index: {}]  }
   0x1   :  { %v28_v0 = vld [vmem:[%s715_s1] sm:$0xff]  ;;  %v29_v1 = vld [vmem:[%s715_s1 + $0x8] sm:$0xff]  ;;  %442 = vmatprep.subr.bf16.mxu0 %v521_v2  ;;  %445 = vmatprep.subr.bf16.mxu1 %v521_v2  ;;  %v119_v7 = vld [vmem:[%s717_s3 + $0x10] sm:$0xff]  ;;  %vm38_vm2 = vcmask 187392  }
   0x2   :  { %v443_v3 = vpack.c.bf16 %v29_v1, %v28_v0  ;;  %v117_v4 = vld [vmem:[%s717_s3] sm:$0xff]  ;;  %369 = vmatprep.mubr.msk.f32.mxu0 %vm522_vm0, %v523_v5  ;;  %v118_v6 = vld [vmem:[%s717_s3 + $0x8] sm:$0xff]  ;;  %v120_v8 = vld [vmem:[%s717_s3 + $0x18] sm:$0xff]  ;;  %404 = vmatprep.mubr.msk.f32.mxu1 %vm522_vm0, %v523_v5 }
   0x3   :  { %v446_v9 = vpack.c.bf16 %v118_v6, %v117_v4  ;;  %v30_v10 = vld [vmem:[%s715_s1 + $0x10] sm:$0x7f]  ;;  %v27_v11 = vld [vmem:[%s714_s0] sm:$0x3]  ;;  %v449_v12 = vpack.c.bf16 %v120_v8, %v119_v7  ;;  %v122_v14 = vld [vmem:[%s717_s3 + $0x28] sm:$0xff] }
   0x4   :  { %444 = vmatpush3.bf16.msra.mxu0 %v443_v3  ;;  %v121_v13 = vld [vmem:[%s717_s3 + $0x20] sm:$0xff] }
   0x5   :  { %367 = vmatprep.subr.mxu0 %v523_v5  ;;  %447 = vmatpush3.bf16.msra.mxu1 %v446_v9 }
   0x6   :  { %448 = vmatprep.subr.bf16.mxu1 %v521_v2 }
   0x7   :  { %12 = vsyncpa [#allocation3], 0  ;;  %v452_v15 = vpack.c.bf16 %v122_v14, %v121_v13  ;;  %v123_v16 = vld [vmem:[%s717_s3 + $0x30] sm:$0xff]  ;;  %v124_v17 = vld [vmem:[%s717_s3 + $0x38] sm:$0xff]  ;;  %s524_s24 = smov [#allocation2]   ;;  %vm304_vm3 = vcmask 107520  }
   0x8   :  { %368 = vmatpush3.msk.msra.mxu0 %vm42_vm1, %v30_v10  ;;  %v455_v18 = vpack.c.bf16 %v124_v17, %v123_v16  ;;  %v125_v19 = vld [vmem:[%s717_s3 + $0x40] sm:$0xff]  ;;  %v126_v20 = vld [vmem:[%s717_s3 + $0x48] sm:$0xff]  ;;  %v127_v22 = vld [vmem:[%s717_s3 + $0x50] sm:$0xff]  ;;  %s312_s25 = sshll.u32 %s524_s24, 4  ;;  %s313_s25 = int_to_ptr.vmem [resolvable:$true] %s312_s25 }
   0x9   :  { %370 = vmatmul.mubr.msk.f32.vlgmr.msra.gmra.mrb[0].mxu0 %vm38_vm2, %v27_v11  ;;  %469 = vmatprep.subr.bf16.mxu0 %v521_v2  ;;  %v458_v21 = vpack.c.bf16 %v126_v20, %v125_v19  ;;  %v128_v23 = vld [vmem:[%s717_s3 + $0x58] sm:$0xff]  ;;  %v129_v25 = vld [vmem:[%s717_s3 + $0x60] sm:$0xff]  ;;  %v130_v26 = vld [vmem:[%s717_s3 + $0x68] sm:$0xff]  ;;  %p502_p1 = scmp.lt.s32.totalorder %s313_s25, %s313_s25 }
   0xa   :  { %450 = vmatpush3.bf16.msra.mxu1 %v449_v12  ;;  %439 = vmatprep.mubr.msk.f32.mxu0 %vm522_vm0, %v523_v5  ;;  %v461_v24 = vpack.c.bf16 %v128_v23, %v127_v22  ;;  %v464_v27 = vpack.c.bf16 %v130_v26, %v129_v25  ;;  %v131_v28 = vld [vmem:[%s717_s3 + $0x70] sm:$0xff]  ;;  %v132_v29 = vld [vmem:[%s717_s3 + $0x78] sm:$0xff]  ;;  %v211_v31 = vld [vmem:[%s719_s5] sm:$0xff] }
   0xb   :  { %451 = vmatprep.subr.bf16.mxu1 %v521_v2  ;;  %v467_v30 = vpack.c.bf16 %v132_v29, %v131_v28  ;;  %v212_v32 = vld [vmem:[%s719_s5 + $0x8] sm:$0xff]  ;;  %v213_v33 = vld [vmem:[%s719_s5 + $0x10] sm:$0xff]  ;;  %v214_v35 = vld [vmem:[%s719_s5 + $0x18] sm:$0xff] }
   0xc   :  { %v470_v34 = vpack.c.bf16 %v212_v32, %v211_v31  ;;  %v473_v36 = vpack.c.bf16 %v214_v35, %v213_v33  ;;  %v215_v37 = vld [vmem:[%s719_s5 + $0x20] sm:$0xff]  ;;  %v216_v38 = vld [vmem:[%s719_s5 + $0x28] sm:$0xff]  ;;  %v217_v40 = vld [vmem:[%s719_s5 + $0x30] sm:$0xff] }
   0xd   :  { %v476_v39 = vpack.c.bf16 %v216_v38, %v215_v37  ;;  %v218_v41 = vld [vmem:[%s719_s5 + $0x38] sm:$0xff]  ;;  %v219_v43 = vld [vmem:[%s719_s5 + $0x40] sm:$0xff]  ;;  %v220_v44 = vld [vmem:[%s719_s5 + $0x48] sm:$0xff] }
   0xe   :  { %453 = vmatpush3.bf16.msra.mxu1 %v452_v15  ;;  %471 = vmatpush3.bf16.msra.mxu0 %v470_v34  ;;  %v479_v42 = vpack.c.bf16 %v218_v41, %v217_v40  ;;  %v482_v45 = vpack.c.bf16 %v220_v44, %v219_v43  ;;  %v221_v46 = vld [vmem:[%s719_s5 + $0x50] sm:$0xff]  ;;  %v222_v47 = vld [vmem:[%s719_s5 + $0x58] sm:$0xff]  ;;  %v223_v49 = vld [vmem:[%s719_s5 + $0x60] sm:$0xff] }
   0xf   :  { %454 = vmatprep.subr.bf16.mxu1 %v521_v2  ;;  %472 = vmatprep.subr.bf16.mxu0 %v521_v2  ;;  %v485_v48 = vpack.c.bf16 %v222_v47, %v221_v46  ;;  %v224_v50 = vld [vmem:[%s719_s5 + $0x68] sm:$0xff]  ;;  %v320_v52 = vld [vmem:[%s716_s2] ss:$0 sm:$0xff]  ;;  %v225_v57 = vld [vmem:[%s719_s5 + $0x70] sm:$0xff] }
  0x10   :  { %v488_v51 = vpack.c.bf16 %v224_v50, %v223_v49  ;;  %v226_v58 = vld [vmem:[%s719_s5 + $0x78] sm:$0xff]  ;;  %v323_v60 = vld [vmem:[%s718_s4] ss:$0 sm:$0xff]  ;;  %s497_s5 = scalar_lea.vmem %s313_s25, 32 }
  0x11   :  { %v491_v59 = vpack.c.bf16 %v226_v58, %v225_v57  ;;  %v324_v1 = vld [vmem:[%s720_s6] ss:$0 sm:$0xff]  ;;  %p498_p0 = scmp.ne.s32.totalorder %s313_s25, %s497_s5  ;;  %p503_p2 = scmp.lt.s32.totalorder %s497_s5, %s497_s5 }
  0x12   :  { %456 = vmatpush3.bf16.msra.mxu1 %v455_v18  ;;  %474 = vmatpush3.bf16.msra.mxu0 %v473_v36 }
  0x13   :  { %457 = vmatprep.subr.bf16.mxu1 %v521_v2  ;;  %475 = vmatprep.subr.bf16.mxu0 %v521_v2  ;;  %p504_p3 = por %p503_p2, %p502_p1 }
  0x15   :  { %p505_p4 = pnand %p504_p3, %p498_p0 }
  0x16   :  { %459 = vmatpush3.bf16.msra.mxu1 %v458_v21  ;;  %477 = vmatpush3.bf16.msra.mxu0 %v476_v39 }
  0x17   :  { %460 = vmatprep.subr.bf16.mxu1 %v521_v2  ;;  %478 = vmatprep.subr.bf16.mxu0 %v521_v2 }
  0x1a   :  { %462 = vmatpush3.bf16.msra.mxu1 %v461_v24  ;;  %480 = vmatpush3.bf16.msra.mxu0 %v479_v42 }
  0x1b   :  { %463 = vmatprep.subr.bf16.mxu1 %v521_v2  ;;  %481 = vmatprep.subr.bf16.mxu0 %v521_v2 }
  0x1e   :  { %465 = vmatpush3.bf16.msra.mxu1 %v464_v27  ;;  %483 = vmatpush3.bf16.msra.mxu0 %v482_v45 }
  0x1f   :  { %466 = vmatprep.subr.bf16.mxu1 %v521_v2  ;;  %484 = vmatprep.subr.bf16.mxu0 %v521_v2 }
  0x22   :  { %468 = vmatpush3.bf16.msra.mxu1 %v467_v30  ;;  %486 = vmatpush3.bf16.msra.mxu0 %v485_v48 }
  0x23   :  { %487 = vmatprep.subr.bf16.mxu0 %v521_v2 }
  0x26   :  { %489 = vmatpush3.bf16.msra.mxu0 %v488_v51 }
  0x27   :  { %490 = vmatprep.subr.bf16.mxu0 %v521_v2 }
  0x2a   :  { %492 = vmatpush3.bf16.msra.mxu0 %v491_v59 }
  0xdc   :  { %v112_v53 = vpop.f32.mrb[0].mxu0 }
  0xdd   :  { %v113_v54 = vadd.f32 %v320_v52, %v112_v53  ;;  %v371_v55 = vpop.f32.mrb[1].mxu0 }
  0xdf   :  { %v116_v56 = vmax.f32 %v113_v54, 0.0 }
  0xe1   :  { %405 = vmatmul.mubr.f32.vlgmr.msra.gmra.mrb[0].mxu1 %v116_v56 }
 0x1b4   :  { %v206_v61 = vpop.f32.mrb[0].mxu1 }
 0x1b5   :  { %v207_v62 = vadd.f32 %v323_v60, %v206_v61  ;;  %v406_v63 = vpop.f32.mrb[1].mxu1 }
 0x1b7   :  { %v210_v0 = vmax.f32 %v207_v62, 0.0 }
 0x1b9   :  { %440 = vmatmul.mubr.f32.vlgmr.msra.gmra.mrb[2].mxu0 %v210_v0 }
 0x28c   :  { %v300_v2 = vpop.f32.mrb[2].mxu0 }
 0x28d   :  { %v301_v3 = vadd.f32 %v324_v1, %v300_v2  ;;  %v441_v4 = vpop.f32.mrb[3].mxu0 }
 0x28f   :  { %305 = vst.msk [vmem:[#allocation2] sm:$0x3] %vm304_vm3, %v301_v3 }
 0x290   :  { %508 = shalt.err (!%p505_p4)
}
 0x291   :  { %s509_s27 = scalar_lea.hbm %s721_s7, 32 }
 0x292   :  { %p510_p5 = scmp.ne.s32.totalorder %s721_s7, %s509_s27  ;;  %p513_p6 = scmp.lt.u32.totalorder %s509_s27, %s721_s7 }
 0x294   :  { %p515_p7 = pnand %p513_p6, %p510_p5 }
 0x296   :  { %518 = shalt.err (!%p515_p7)
}
 0x297   :  { %315 = dma.vmem_to_hbm [thread:$0]  %s313_s25, 32, %s721_s7, [#allocation3]  }
 0x298   :  { %519 = dma.done.wait [#allocation3], 32  }
 0x299   :  { %520 = vsyncadd [#allocation3], 4294967264 }
 0x29a   :  { %319 = vsyncpa [#allocation3], 1 }

</bundles_post_ra>
